<compile_context>
chip_gen: v5e
topology: v5e:2x2
jax: 0.10.0
libtpu: 0.0.40
codegen_flags: <defaults>
</compile_context>

<pallas_src>
import functools
import math

import jax
import jax.numpy as jnp
from jax.experimental import pallas as pl
from jax.experimental.pallas import tpu as pltpu

LOG_STD_MAX = 2.0
LOG_STD_MIN = -20.0

# Per-action-dim constant of the squashed-Gaussian log-prob, folded at trace time:
#   0.5*log(2*pi)  (Normal normalizer)  +  2*log(2)  (tanh correction constant)
_LOGP_CONST_PER_DIM = 0.5 * math.log(2.0 * math.pi) + 2.0 * math.log(2.0)


def _softplus(x):
    # numerically stable softplus, matches F.softplus semantics
    return jnp.maximum(x, 0.0) + jnp.log1p(jnp.exp(-jnp.abs(x)))


def _actor_kernel(act_limit, obs_dim, act_dim, h1, h2, compute_dtype,
                  xe_ref, w1_ref, w2_ref, wh_ref, b_ref, out_ref):
    xe = xe_ref[...]                      # (TILE_B, obs_dim + act_dim), f32
    x = xe[:, :obs_dim]
    eps = xe[:, obs_dim:]

    b = b_ref[...]                        # (1, h1 + h2 + 2*act_dim), f32
    b1 = b[:, :h1]
    b2 = b[:, h1:h1 + h2]
    bh = b[:, h1 + h2:]

    # --- MLP trunk: Linear -> ReLU -> Linear -> ReLU (output_activation == activation) ---
    h = jnp.dot(x.astype(compute_dtype), w1_ref[...],
                preferred_element_type=jnp.float32) + b1
    h = jnp.maximum(h, 0.0)
    h = jnp.dot(h.astype(compute_dtype), w2_ref[...],
                preferred_element_type=jnp.float32) + b2
    h = jnp.maximum(h, 0.0)

    # --- fused mu / log_std heads: one MXU push instead of two ---
    heads = jnp.dot(h.astype(compute_dtype), wh_ref[...],
                    preferred_element_type=jnp.float32) + bh
    mu = heads[:, :act_dim]
    log_std = jnp.clip(heads[:, act_dim:], LOG_STD_MIN, LOG_STD_MAX)
    std = jnp.exp(log_std)

    # --- rsample: pi = mu + std * eps (noise supplied from the host) ---
    pi = mu + std * eps

    # --- log-prob (z == eps exactly) + tanh correction, fused into ONE reduction,
    #     per-element constants folded into a single scalar subtraction ---
    t = (-0.5) * eps * eps - log_std + 2.0 * pi + 2.0 * _softplus(-2.0 * pi)
    logp = jnp.sum(t, axis=-1, keepdims=True) - act_dim * _LOGP_CONST_PER_DIM

    # --- squash, scale, and write one packed (action | logp) tile ---
    act = act_limit * jnp.tanh(pi)
    out_ref[...] = jnp.concatenate([act, logp], axis=-1).astype(out_ref.dtype)


def _round_up(x, m):
    return ((x + m - 1) // m) * m


def squashed_gaussian_actor(obs, params, eps, act_limit,
                            *, compute_dtype=jnp.float32, tile_b_max=512):
    """Pallas forward pass. Returns (pi_action, logp_pi)."""
    w1, b1, w2, b2, wmu, bmu, wls, bls = params
    B, obs_dim = obs.shape
    act_dim = wmu.shape[1]
    h1 = w1.shape[1]
    h2 = w2.shape[1]

    # --- pack inputs: fewer, larger DMAs ---
    xe = jnp.concatenate([obs, eps], axis=-1).astype(jnp.float32)          # (B, obs+act)
    wh = jnp.concatenate([wmu, wls], axis=-1).astype(compute_dtype)        # (h2, 2*act)
    b_all = jnp.concatenate([b1, b2, bmu, bls], axis=-1).astype(jnp.float32)
    w1c = w1.astype(compute_dtype)
    w2c = w2.astype(compute_dtype)

    # --- batch tiling (TILE_B multiple of 8; capped so v7x's 64 MiB VMEM is safe) ---
    tile_b = min(int(tile_b_max), _round_up(B, 8))
    b_pad = _round_up(B, tile_b)
    if b_pad != B:
        xe = jnp.pad(xe, ((0, b_pad - B), (0, 0)))

    n_lanes = obs_dim + act_dim
    n_bias = h1 + h2 + 2 * act_dim

    grid_spec = pltpu.PrefetchScalarGridSpec(
        num_scalar_prefetch=0,
        grid=(b_pad // tile_b,),
        in_specs=[
            pl.BlockSpec((tile_b, n_lanes), lambda i: (i, 0)),        # obs|eps (tiled)
            pl.BlockSpec((obs_dim, h1), lambda i: (0, 0)),            # w1 (resident)
            pl.BlockSpec((h1, h2), lambda i: (0, 0)),                 # w2 (resident)
            pl.BlockSpec((h2, 2 * act_dim), lambda i: (0, 0)),        # fused heads W
            pl.BlockSpec((1, n_bias), lambda i: (0, 0)),              # all biases
        ],
        out_specs=pl.BlockSpec((tile_b, act_dim + 1), lambda i: (i, 0)),
    )

    out = pl.pallas_call(
        functools.partial(_actor_kernel, float(act_limit), obs_dim, act_dim,
                          h1, h2, compute_dtype),
        out_shape=jax.ShapeDtypeStruct((b_pad, act_dim + 1), jnp.float32),
        grid_spec=grid_spec,
        compiler_params=pltpu.CompilerParams(
            dimension_semantics=("parallel",)),
    )(xe, w1c, w2c, wh, b_all)

    out = out[:B]
    return out[:, :act_dim], out[:, act_dim]


def init_params(key, obs_dim, hidden_sizes, act_dim):
    """Deterministic synthetic parameters (stored as (in, out) = W.T of nn.Linear)."""
    sizes = [obs_dim] + list(hidden_sizes)
    params = []
    keys = jax.random.split(key, len(sizes) + 1)
    # trunk
    for j in range(len(sizes) - 1):
        fan_in = sizes[j]
        bound = 1.0 / math.sqrt(fan_in)
        kw, kb = jax.random.split(keys[j])
        w = jax.random.uniform(kw, (sizes[j], sizes[j + 1]), jnp.float32, -bound, bound)
        b = jax.random.uniform(kb, (1, sizes[j + 1]), jnp.float32, -bound, bound)
        params += [w, b]
    # mu head / log_std head
    fan_in = sizes[-1]
    bound = 1.0 / math.sqrt(fan_in)
    for kk in (keys[-2], keys[-1]):
        kw, kb = jax.random.split(kk)
        w = jax.random.uniform(kw, (fan_in, act_dim), jnp.float32, -bound, bound)
        b = jax.random.uniform(kb, (1, act_dim), jnp.float32, -bound, bound)
        params += [w, b]
    return tuple(params)


def reference_forward(obs, params, eps, act_limit):
    """Pure-JAX reference matching the PyTorch module (deterministic=False, with_logprob=True)."""
    w1, b1, w2, b2, wmu, bmu, wls, bls = params
    h = jnp.maximum(obs @ w1 + b1, 0.0)
    h = jnp.maximum(h @ w2 + b2, 0.0)
    mu = h @ wmu + bmu
    log_std = jnp.clip(h @ wls + bls, LOG_STD_MIN, LOG_STD_MAX)
    std = jnp.exp(log_std)
    pi = mu + std * eps
    logp = jnp.sum(-0.5 * ((pi - mu) / std) ** 2 - log_std
                   - 0.5 * math.log(2.0 * math.pi), axis=-1)
    logp = logp - jnp.sum(2.0 * (math.log(2.0) - pi - jax.nn.softplus(-2.0 * pi)), axis=-1)
    return act_limit * jnp.tanh(pi), logp


if __name__ == "__main__":
    key = jax.random.PRNGKey(0)
    k_obs, k_eps, k_par = jax.random.split(key, 3)

    B, obs_dim, act_dim = 8, 16, 4
    hidden_sizes = (32, 32)
    act_limit = 1.0

    obs = jax.random.normal(k_obs, (B, obs_dim), jnp.float32)
    eps = jax.random.normal(k_eps, (B, act_dim), jnp.float32)
    params = init_params(k_par, obs_dim, hidden_sizes, act_dim)

    # f32 compute path (exactly matches the reference); pass
    # compute_dtype=jnp.bfloat16 on v6e/v7x for faster MXU + half the DMA bytes.
    pi_action, logp_pi = squashed_gaussian_actor(obs, params, eps, act_limit)
    jax.block_until_ready((pi_action, logp_pi))

    ref_act, ref_logp = reference_forward(obs, params, eps, act_limit)
    assert pi_action.shape == (B, act_dim) and logp_pi.shape == (B,)
    assert jnp.allclose(pi_action, ref_act, atol=1e-5, rtol=1e-5)
    assert jnp.allclose(logp_pi, ref_logp, atol=1e-4, rtol=1e-4)

    print("KERNEL_OK")
</pallas_src>

<mosaic_0001>
module attributes {stable_mosaic.version = 11 : i64} {
  func.func @_actor_kernel(%arg0: i32, %arg1: memref<8x20xf32, #tpu.memory_space<vmem>>, %arg2: memref<16x32xf32, #tpu.memory_space<vmem>>, %arg3: memref<32x32xf32, #tpu.memory_space<vmem>>, %arg4: memref<32x8xf32, #tpu.memory_space<vmem>>, %arg5: memref<1x72xf32, #tpu.memory_space<vmem>>, %arg6: memref<8x5xf32, #tpu.memory_space<vmem>>) attributes {dimension_semantics = [#tpu.dimension_semantics<parallel>], iteration_bounds = array<i64: 1>, scalar_prefetch = 0 : i64, scratch_operands = 0 : i64, tpu.core_type = #tpu.core_type<tc>, window_params = [{transform_indices = @transform_0, window_bounds = array<i64: 8, 20>}, {pipeline_mode = #tpu.pipeline_mode<synchronous>, transform_indices = @transform_1, window_bounds = array<i64: 16, 32>}, {pipeline_mode = #tpu.pipeline_mode<synchronous>, transform_indices = @transform_2, window_bounds = array<i64: 32, 32>}, {pipeline_mode = #tpu.pipeline_mode<synchronous>, transform_indices = @transform_3, window_bounds = array<i64: 32, 8>}, {pipeline_mode = #tpu.pipeline_mode<synchronous>, transform_indices = @transform_4, window_bounds = array<i64: 1, 72>}, {transform_indices = @transform_5, window_bounds = array<i64: 8, 5>}]} {
    %c0 = arith.constant 0 : index
    %c0_0 = arith.constant 0 : index
    %0 = vector.load %arg1[%c0, %c0_0] : memref<8x20xf32, #tpu.memory_space<vmem>>, vector<8x20xf32>
    %1 = vector.extract_strided_slice %0 {offsets = [0, 0], sizes = [8, 16], strides = [1, 1]} : vector<8x20xf32> to vector<8x16xf32>
    %2 = vector.extract_strided_slice %0 {offsets = [0, 16], sizes = [8, 4], strides = [1, 1]} : vector<8x20xf32> to vector<8x4xf32>
    %c0_1 = arith.constant 0 : index
    %c0_2 = arith.constant 0 : index
    %3 = vector.load %arg5[%c0_1, %c0_2] : memref<1x72xf32, #tpu.memory_space<vmem>>, vector<1x72xf32>
    %4 = vector.extract_strided_slice %3 {offsets = [0, 0], sizes = [1, 32], strides = [1, 1]} : vector<1x72xf32> to vector<1x32xf32>
    %5 = vector.extract_strided_slice %3 {offsets = [0, 32], sizes = [1, 32], strides = [1, 1]} : vector<1x72xf32> to vector<1x32xf32>
    %6 = vector.extract_strided_slice %3 {offsets = [0, 64], sizes = [1, 8], strides = [1, 1]} : vector<1x72xf32> to vector<1x8xf32>
    %c0_3 = arith.constant 0 : index
    %c0_4 = arith.constant 0 : index
    %7 = vector.load %arg2[%c0_3, %c0_4] : memref<16x32xf32, #tpu.memory_space<vmem>>, vector<16x32xf32>
    %cst = arith.constant dense<0.000000e+00> : vector<8x32xf32>
    %8 = tpu.matmul %1, %7, %cst {dimension_numbers = #tpu.dot_dimension_numbers<[1], [0], [0], [1], [0, 0, 1, 1], [], []>} : vector<8x16xf32>, vector<16x32xf32>, vector<8x32xf32> -> vector<8x32xf32>
    %9 = vector.broadcast %4 : vector<1x32xf32> to vector<8x32xf32>
    %10 = arith.addf %8, %9 : vector<8x32xf32>
    %cst_5 = arith.constant 0.000000e+00 : f32
    %11 = vector.broadcast %cst_5 : f32 to vector<8x32xf32>
    %12 = arith.maximumf %10, %11 : vector<8x32xf32>
    %c0_6 = arith.constant 0 : index
    %c0_7 = arith.constant 0 : index
    %13 = vector.load %arg3[%c0_6, %c0_7] : memref<32x32xf32, #tpu.memory_space<vmem>>, vector<32x32xf32>
    %cst_8 = arith.constant dense<0.000000e+00> : vector<8x32xf32>
    %14 = tpu.matmul %12, %13, %cst_8 {dimension_numbers = #tpu.dot_dimension_numbers<[1], [0], [0], [1], [0, 0, 1, 1], [], []>} : vector<8x32xf32>, vector<32x32xf32>, vector<8x32xf32> -> vector<8x32xf32>
    %15 = vector.broadcast %5 : vector<1x32xf32> to vector<8x32xf32>
    %16 = arith.addf %14, %15 : vector<8x32xf32>
    %cst_9 = arith.constant 0.000000e+00 : f32
    %17 = vector.broadcast %cst_9 : f32 to vector<8x32xf32>
    %18 = arith.maximumf %16, %17 : vector<8x32xf32>
    %c0_10 = arith.constant 0 : index
    %c0_11 = arith.constant 0 : index
    %19 = vector.load %arg4[%c0_10, %c0_11] : memref<32x8xf32, #tpu.memory_space<vmem>>, vector<32x8xf32>
    %cst_12 = arith.constant dense<0.000000e+00> : vector<8x8xf32>
    %20 = tpu.matmul %18, %19, %cst_12 {dimension_numbers = #tpu.dot_dimension_numbers<[1], [0], [0], [1], [0, 0, 1, 1], [], []>} : vector<8x32xf32>, vector<32x8xf32>, vector<8x8xf32> -> vector<8x8xf32>
    %21 = vector.broadcast %6 : vector<1x8xf32> to vector<8x8xf32>
    %22 = arith.addf %20, %21 : vector<8x8xf32>
    %23 = vector.extract_strided_slice %22 {offsets = [0, 0], sizes = [8, 4], strides = [1, 1]} : vector<8x8xf32> to vector<8x4xf32>
    %24 = vector.extract_strided_slice %22 {offsets = [0, 4], sizes = [8, 4], strides = [1, 1]} : vector<8x8xf32> to vector<8x4xf32>
    %cst_13 = arith.constant -2.000000e+01 : f32
    %cst_14 = arith.constant 2.000000e+00 : f32
    %25 = vector.broadcast %cst_13 : f32 to vector<8x4xf32>
    %26 = arith.maximumf %25, %24 : vector<8x4xf32>
    %27 = vector.broadcast %cst_14 : f32 to vector<8x4xf32>
    %28 = arith.minimumf %27, %26 : vector<8x4xf32>
    %29 = math.exp %28 : vector<8x4xf32>
    %30 = arith.mulf %29, %2 : vector<8x4xf32>
    %31 = arith.addf %23, %30 : vector<8x4xf32>
    %cst_15 = arith.constant -5.000000e-01 : f32
    %32 = vector.broadcast %cst_15 : f32 to vector<8x4xf32>
    %33 = arith.mulf %32, %2 : vector<8x4xf32>
    %34 = arith.mulf %33, %2 : vector<8x4xf32>
    %35 = arith.subf %34, %28 : vector<8x4xf32>
    %cst_16 = arith.constant 2.000000e+00 : f32
    %36 = vector.broadcast %cst_16 : f32 to vector<8x4xf32>
    %37 = arith.mulf %36, %31 : vector<8x4xf32>
    %38 = arith.addf %35, %37 : vector<8x4xf32>
    %cst_17 = arith.constant -2.000000e+00 : f32
    %39 = vector.broadcast %cst_17 : f32 to vector<8x4xf32>
    %40 = arith.mulf %39, %31 : vector<8x4xf32>
    %cst_18 = arith.constant 0.000000e+00 : f32
    %41 = vector.broadcast %cst_18 : f32 to vector<8x4xf32>
    %42 = arith.maximumf %40, %41 : vector<8x4xf32>
    %43 = math.absf %40 : vector<8x4xf32>
    %cst_19 = arith.constant 0.000000e+00 : f32
    %44 = vector.broadcast %cst_19 : f32 to vector<8x4xf32>
    %45 = arith.subf %44, %43 : vector<8x4xf32>
    %46 = math.exp %45 : vector<8x4xf32>
    %47 = math.log1p %46 : vector<8x4xf32>
    %48 = arith.addf %42, %47 : vector<8x4xf32>
    %cst_20 = arith.constant 2.000000e+00 : f32
    %49 = vector.broadcast %cst_20 : f32 to vector<8x4xf32>
    %50 = arith.mulf %49, %48 : vector<8x4xf32>
    %51 = arith.addf %38, %50 : vector<8x4xf32>
    %cst_21 = arith.constant dense<0.000000e+00> : vector<8xf32>
    %52 = vector.multi_reduction <add>, %51, %cst_21 [1] : vector<8x4xf32> to vector<8xf32>
    %53 = vector.shape_cast %52 : vector<8xf32> to vector<8x1xf32>
    %cst_22 = arith.constant 9.220932 : f32
    %54 = vector.broadcast %cst_22 : f32 to vector<8x1xf32>
    %55 = arith.subf %53, %54 : vector<8x1xf32>
    %56 = math.tanh %31 : vector<8x4xf32>
    %cst_23 = arith.constant 1.000000e+00 : f32
    %57 = vector.broadcast %cst_23 : f32 to vector<8x4xf32>
    %58 = arith.mulf %57, %56 : vector<8x4xf32>
    %59 = tpu.concatenate %58, %55 in 1 : vector<8x4xf32>, vector<8x1xf32> -> vector<8x5xf32>
    %c0_24 = arith.constant 0 : index
    %c0_25 = arith.constant 0 : index
    %60 = vector.load %arg6[%c0_24, %c0_25] : memref<8x5xf32, #tpu.memory_space<vmem>>, vector<8x5xf32>
    tpu.vector_store %arg6[%c0_24, %c0_25], %59 {strides = array<i32>} : memref<8x5xf32, #tpu.memory_space<vmem>>, vector<8x5xf32>,
    return
  }
  func.func @transform_0(%arg0: i32) -> (i32, i32) {
    %c0_i32 = arith.constant 0 : i32
    %c0_i32_0 = arith.constant 0 : i32
    return %arg0, %c0_i32 : i32, i32
  }
  func.func @transform_1(%arg0: i32) -> (i32, i32) {
    %c0_i32 = arith.constant 0 : i32
    %c0_i32_0 = arith.constant 0 : i32
    %c0_i32_1 = arith.constant 0 : i32
    return %c0_i32, %c0_i32_0 : i32, i32
  }
  func.func @transform_2(%arg0: i32) -> (i32, i32) {
    %c0_i32 = arith.constant 0 : i32
    %c0_i32_0 = arith.constant 0 : i32
    %c0_i32_1 = arith.constant 0 : i32
    return %c0_i32, %c0_i32_0 : i32, i32
  }
  func.func @transform_3(%arg0: i32) -> (i32, i32) {
    %c0_i32 = arith.constant 0 : i32
    %c0_i32_0 = arith.constant 0 : i32
    %c0_i32_1 = arith.constant 0 : i32
    return %c0_i32, %c0_i32_0 : i32, i32
  }
  func.func @transform_4(%arg0: i32) -> (i32, i32) {
    %c0_i32 = arith.constant 0 : i32
    %c0_i32_0 = arith.constant 0 : i32
    %c0_i32_1 = arith.constant 0 : i32
    return %c0_i32, %c0_i32_0 : i32, i32
  }
  func.func @transform_5(%arg0: i32) -> (i32, i32) {
    %c0_i32 = arith.constant 0 : i32
    %c0_i32_0 = arith.constant 0 : i32
    return %arg0, %c0_i32 : i32, i32
  }
}

</mosaic_0001>

<bundles_post_ra>
// kernel: tpu_custom_call.1
= control target key start
LH: loop header
LB: loop body
LE: loop exit
PB: predicated region body
PF: predicated region fallthrough
CT: control target
= control target key end

     0   :  { %10 = vsyncpa [#allocation3], 0  ;;  %s368_s0 = inlined_call_operand.vmem [shape: f32[8,20], index: 0, kind: input, shape index: {}]   ;;  %s369_s1 = inlined_call_operand.hbm [shape: f32[16,32], index: 1, kind: input, shape index: {}]   ;;  %s370_s2 = inlined_call_operand.vmem [shape: f32[32,32], index: 2, kind: input, shape index: {}]   ;;  %s371_s3 = inlined_call_operand.vmem [shape: f32[32,8], index: 3, kind: input, shape index: {}]   ;;  %s372_s4 = inlined_call_operand.vmem [shape: f32[1,72], index: 4, kind: input, shape index: {}]   ;;  %s373_s5 = inlined_call_operand.hbm [shape: f32[8,5], index: 5, kind: output, shape index: {}]  }
   0x1   :  { %11 = vsyncpa [#allocation4], 0  ;;  %s18_s20 = sshll.u32 %s369_s1, 4  ;;  %s285_s21 = smov [#allocation2]   ;;  %s19_s20 = int_to_ptr.hbm [resolvable:$true] %s18_s20 }
   0x2   :  { %s20_s22 = sshll.u32 %s285_s21, 4  ;;  %s286_s23 = smov 128   ;;  %s21_s22 = int_to_ptr.vmem [resolvable:$true] %s20_s22 }
   0x3   :  { %s287_s24 = smov 8  }
   0x4   :  { %26 = dma.hbm_to_vmem [thread:$0]  %s19_s20, 256, %s21_s22, [#allocation3], %s286_s23, %s286_s23, %s287_s24  }
   0x5   :  { %281 = dma.done.wait [#allocation3], 256  }
   0x6   :  { %282 = vsyncadd [#allocation3], 4294967040  ;;  %v40_v0 = vld [vmem:[#allocation2 + $0x8] sm:$0xff]  ;;  %v39_v1 = vld [vmem:[#allocation2] sm:$0xff]  ;;  %vm44_vm0 = vcmask 130048   ;;  %s288_s30 = smov 96  }
   0x7   :  { %62 = vmatpush.msra.mxu0 %v40_v0  ;;  %v332_v2 = vld [vmem:[%s368_s0] sm:$0xff]  ;;  %v72_v3 = vld [vmem:[%s370_s2 + $0x18] sm:$0xff]  ;;  %v71_v5 = vld [vmem:[%s370_s2 + $0x10] sm:$0xff]  ;;  %vm76_vm1 = vcmask 261120   ;;  %s289_s14 = smov 64   ;;  %s290_s15 = smov 116  }
   0x8   :  { %92 = vmatpush.msra.mxu1 %v72_v3  ;;  %v224_v4 = vld [vmem:[%s372_s4] ss:$0 sm:$0xff]  ;;  %v70_v6 = vld [vmem:[%s370_s2 + $0x8] sm:$0xff]  ;;  %v104_v8 = vld [vmem:[%s371_s3 + $0x18] sm:$0xff]  ;;  %135 = vrot.lane.b32.xlu1 %v332_v2, %s290_s15  ;;  %s291_s19 = smov 12   ;;  %s292_s20 = smov 124  }
   0x9   :  { %63 = vmatpush.msra.mxu0 %v39_v1  ;;  %73 = vrot.lane.b32.xlu0 %v224_v4, %s288_s30  ;;  %v69_v7 = vld [vmem:[%s370_s2] sm:$0xff]  ;;  %v103_v9 = vld [vmem:[%s371_s3 + $0x10] sm:$0xff]  ;;  %v102_v13 = vld [vmem:[%s371_s3 + $0x8] sm:$0xff]  ;;  %v144_v48 = vmul.f32 -0.5, %v332_v2  ;;  %s294_s21 = smov 112   ;;  %vm183_vm3 = vcmask 31744  }
   0xa   :  { %209 = vmatmul.msk.f32.vlgmr.msra.gmra.mxu0 %vm44_vm0, %v332_v2  ;;  %93 = vmatpush.msra.mxu1 %v71_v5  ;;  %v101_v14 = vld [vmem:[%s371_s3] sm:$0xff]  ;;  %s293_s3 = smov 16   ;;  %s295_s22 = smov [#allocation5]   ;;  %vm190_vm4 = vcmask 39936  }
   0xb   :  { %123 = vmatpush.msra.mxu2 %v104_v8  ;;  %v145_v49 = vmul.f32 %v144_v48, %v332_v2  ;;  %s197_s23 = sshll.u32 %s295_s22, 4  ;;  %s199_s26 = sshll.u32 %s373_s5, 4  ;;  %s198_s23 = int_to_ptr.vmem [resolvable:$true] %s197_s23  ;;  %s200_s26 = int_to_ptr.hbm [resolvable:$true] %s199_s26 }
   0xc   :  { %94 = vmatpush.msra.mxu1 %v70_v6 }
   0xd   :  { %124 = vmatpush.msra.mxu2 %v103_v9 }
   0xe   :  { %95 = vmatpush.msra.mxu1 %v69_v7 }
   0xf   :  { %125 = vmatpush.msra.mxu2 %v102_v13 }
  0x11   :  { %105 = vrot.lane.b32.xlu0 %v224_v4, %s289_s14  ;;  %126 = vmatpush.msra.mxu2 %v101_v14 }
  0x7a   :  { %v136_v25 = vpop.permute.xlu1 %135 }
  0x7b   :  { %v74_v15 = vpop.permute.xlu0 %73 }
  0x83   :  { %v106_v19 = vpop.permute.xlu0 %105 }
  0x87   :  { %v65_v10 = vpop.f32.mrf.mxu0 }
  0x88   :  { %v66_v11 = vadd.f32 %v224_v4, %v65_v10 }
  0x8a   :  { %v68_v12 = vmax.f32 %v66_v11, 0.0 }
  0x8c   :  { %210 = vmatmul.msk.f32.vlgmr.msra.gmra.mxu1 %vm76_vm1, %v68_v12 }
 0x109   :  { %v97_v16 = vpop.f32.mrf.mxu1 }
 0x10a   :  { %v98_v17 = vadd.f32 %v97_v16, %v74_v15 }
 0x10c   :  { %v100_v18 = vmax.f32 %v98_v17, 0.0 }
 0x10e   :  { %211 = vmatmul.msk.f32.vlgmr.msra.gmra.mxu2 %vm76_vm1, %v100_v18 }
 0x191   :  { %v128_v20 = vpop.f32.mrf.mxu2 }
 0x192   :  { %v129_v21 = vadd.f32 %v128_v20, %v106_v19 }
 0x194   :  { %v131_v22 = vmax.f32 %v129_v21, -20.0 }
 0x196   :  { %v132_v23 = vmin.f32 %v131_v22, 2.0 }
 0x198   :  { %147 = vrot.lane.b32.xlu2 %v132_v23, %s291_s19  ;;  %v133_v24 = vmul.f32 1.442695, %v132_v23 }
 0x19a   :  { %225 = vpow2.f32 %v133_v24 }
 0x1a0   :  { %v226_v26 = vpop.eup %225 }
 0x1a1   :  { %v138_v27 = vmul.f32 %v226_v26, %v136_v25 }
 0x1a3   :  { %140 = vrot.lane.b32.xlu1 %v138_v27, %s292_s20 }
 0x1f2   :  { %v148_v47 = vpop.permute.xlu2 %147 }
 0x1f3   :  { %v150_v51 = vsub.f32 %v145_v49, %v148_v47 }
 0x215   :  { %v141_v28 = vpop.permute.xlu1 %140 }
 0x216   :  { %v143_v29 = vadd.f32 %v141_v28, %v129_v21 }
 0x218   :  { %v157_v30 = vmul.f32 -2.0, %v143_v29  ;;  %v151_v31 = vmul.f32 2.0, %v143_v29 }
 0x21a   :  { %v159_v32 = vand.u32 2147483647, %v157_v30  ;;  %153 = vrot.lane.b32.xlu2 %v151_v31, %s293_s3  ;;  %v158_v43 = vmax.f32 %v157_v30, 0.0 }
 0x21c   :  { %v160_v33 = vsub.f32 0.0, %v159_v32 }
 0x21e   :  { %v161_v34 = vmul.f32 1.442695, %v160_v33 }
 0x220   :  { %227 = vpow2.f32 %v161_v34 }
 0x226   :  { %v228_v35 = vpop.eup %227 }
 0x227   :  { %v163_v36 = vadd.f32 1.0, %v228_v35  ;;  %v166_v37 = vmul.f32 -0.5, %v228_v35  ;;  %v169_v39 = vand.u32 2147483647, %v228_v35 }
 0x229   :  { %229 = vlog2.f32 %v163_v36  ;;  %v167_v38 = vadd.f32 1.0, %v166_v37  ;;  %vm170_vm2 = vcmp.lt.f32.partialorder %v169_v39, 0.0004427343 }
 0x22a   :  { %231 = vtanh.f32 %v143_v29 }
 0x22b   :  { %v168_v42 = vmul.f32 %v228_v35, %v167_v38 }
 0x22f   :  { %v230_v40 = vpop.eup %229 }
 0x230   :  { %v165_v41 = vmul.f32 0.6931472, %v230_v40  ;;  %v232_v59 = vpop.eup %231 }
 0x232   :  { %v171_v44 = vsel %vm170_vm2, %v168_v42, %v165_v41 }
 0x233   :  { %v172_v45 = vadd.f32 %v171_v44, %v158_v43 }
 0x235   :  { %v173_v46 = vmul.f32 2.0, %v172_v45 }
 0x237   :  { %175 = vrot.lane.b32.xlu0 %v173_v46, %s293_s3 }
 0x274   :  { %v154_v50 = vpop.permute.xlu2 %153 }
 0x275   :  { %v156_v52 = vadd.f32 %v154_v50, %v150_v51 }
 0x2a9   :  { %v176_v53 = vpop.permute.xlu0 %175 }
 0x2aa   :  { %v178_v54 = vadd.f32 %v176_v53, %v156_v52 }
 0x2ac   :  { %180 = vrot.lane.b32.xlu1 %v178_v54, %s294_s21 }
 0x31e   :  { %v181_v55 = vpop.permute.xlu1 %180 }
 0x31f   :  { %v184_v56 = vsel %vm183_vm3, %v181_v55, 0.0 }
 0x320   :  { %185 = vadd.xlane.f32.xlu2 %v184_v56 }
 0x393   :  { %v186_v57 = vpop.xlane.xlu2 %185 }
 0x394   :  { %v212_v58 = vadd.f32 -9.220932, %v186_v57 }
 0x396   :  { %v189_v60 = vsel %vm183_vm3, %v232_v59, %v212_v58 }
 0x397   :  { %191 = vst.msk [vmem:[#allocation5] sm:$0xff] %vm190_vm4, %v189_v60 }
 0x398   :  { %202 = dma.vmem_to_hbm [thread:$0]  %s198_s23, 128, %s200_s26, [#allocation4]  }
 0x399   :  { %283 = dma.done.wait [#allocation4], 128  }
 0x39a   :  { %284 = vsyncadd [#allocation4], 4294967168 }
 0x39b   :  { %207 = vsyncpa [#allocation3], 1 }
 0x39c   :  { %208 = vsyncpa [#allocation4], 1 }

</bundles_post_ra>
